<compile_context>
chip_gen: v6e
topology: v6e:2x2x1
jax: 0.10.0
libtpu: 0.0.40
codegen_flags: <defaults>
</compile_context>

<pallas_src>
import jax
import jax.numpy as jnp
from jax.experimental import pallas as pl
from jax.experimental.pallas import tpu as pltpu


def _round_up(n, m):
    return ((n + m - 1) // m) * m


def _linear_kernel(x_ref, w_ref, b_ref, o_ref):
    # x_ref: (tile_b, K) f32  -- cast to the weight dtype (bf16) in-kernel.
    # w_ref: (K, C_pad) bf16 (grid-invariant), b_ref: (1, C_pad) f32.
    # MXU matmul with f32 accumulation, bias broadcast on the VPU, then one
    # lane-dense store of the (tile_b, C_pad) output tile.
    x = x_ref[...].astype(w_ref.dtype)
    acc = jnp.dot(x, w_ref[...], preferred_element_type=jnp.float32)
    o_ref[...] = (acc + b_ref[...]).astype(o_ref.dtype)


def linear_classifier(x, w_t, b, *, tile_b=None, weight_dtype=jnp.bfloat16,
                      out_dtype=None, tile_b_cap=2048,
                      vmem_budget_bytes=24 * 1024 * 1024):
    """y = x @ w_t + b   (== torch.nn.Linear(512, cls_classes)(x)).

    x:   [B, 512]  float32 features (NOT pre-cast; cast happens in-kernel)
    w_t: [512, C]  float32 (transposed nn.Linear weight)
    b:   [C]       float32
    """
    B, K = x.shape
    K2, C = w_t.shape
    assert K == K2, "weight / feature dim mismatch"
    assert K % 128 == 0, "feature dim must be lane-aligned (512 for this module)"
    assert b.shape == (C,)

    x_bytes = jnp.dtype(x.dtype).itemsize
    w_bytes = jnp.dtype(weight_dtype).itemsize
    if out_dtype is None:
        out_dtype = x.dtype
    out_bytes = jnp.dtype(out_dtype).itemsize

    # Lane-dense output: pad the class dim up to a multiple of 128 lanes.
    C_pad = _round_up(C, 128)

    # Sublane granularity of the batch tile for the HBM-resident x dtype.
    row_mult = 8 if x_bytes == 4 else 16

    # Batch tile: guarantee >=2 grid steps whenever B allows (v7x: 2 TCs get
    # work, and double-buffering has something to pipeline); cap so the
    # working set stays inside a conservative VMEM budget on every chip gen.
    if tile_b is None:
        if B > row_mult:
            tile_b = min(tile_b_cap, _round_up(pl.cdiv(B, 2), row_mult))
        else:
            tile_b = row_mult
    tile_b = max(row_mult, _round_up(tile_b, row_mult))

    # VMEM working set: double-buffered x and out tiles + weight + bias.
    def working_set(tb):
        x_bufs = 2 * tb * K * x_bytes
        o_bufs = 2 * tb * C_pad * out_bytes
        w_bufs = 2 * K * C_pad * w_bytes
        b_bufs = 2 * 8 * C_pad * 4           # (1, C_pad) f32 block, sublane-padded
        return x_bufs + o_bufs + w_bufs + b_bufs

    while working_set(tile_b) > vmem_budget_bytes and tile_b > row_mult:
        tile_b = max(row_mult, _round_up(tile_b // 2, row_mult))

    # No batch padding: the last partial block overshoots; its out-of-bounds
    # output rows are masked by Pallas and never appear in the result.
    grid_b = pl.cdiv(B, tile_b)

    # Weight / bias prep is tiny (grid-invariant, ~128 KiB at C_pad=128).
    w_p = jnp.pad(w_t.astype(weight_dtype), ((0, 0), (0, C_pad - C)))
    b_p = jnp.pad(b.astype(jnp.float32), (0, C_pad - C)).reshape(1, C_pad)

    cost = pl.CostEstimate(
        flops=2 * B * K * C_pad,
        transcendentals=0,
        bytes_accessed=(B * K * x_bytes + K * C_pad * w_bytes
                        + C_pad * 4 + B * C_pad * out_bytes),
    )

    out = pl.pallas_call(
        _linear_kernel,
        out_shape=jax.ShapeDtypeStruct((B, C_pad), out_dtype),
        grid_spec=pltpu.PrefetchScalarGridSpec(
            num_scalar_prefetch=0,
            grid=(grid_b,),
            in_specs=[
                pl.BlockSpec((tile_b, K), lambda i: (i, 0)),   # x tile (streams over batch)
                pl.BlockSpec((K, C_pad), lambda i: (0, 0)),    # weight (grid-invariant)
                pl.BlockSpec((1, C_pad), lambda i: (0, 0)),    # bias   (grid-invariant)
            ],
            out_specs=pl.BlockSpec((tile_b, C_pad), lambda i: (i, 0)),
        ),
        compiler_params=pltpu.CompilerParams(
            # Batch axis is embarrassingly parallel -> sharded across v7x's 2 TCs.
            dimension_semantics=("parallel",),
            # Headroom above the 24 MiB working-set cap; safe on v5e/v6e/v7x.
            vmem_limit_bytes=32 * 1024 * 1024,
        ),
        cost_estimate=cost,
    )(x, w_p, b_p)

    # Only the lane slice remains outside the kernel (kept lane-dense inside);
    # run the whole wrapper under jit so XLA fuses this with the epilogue.
    return out[:, :C]


if __name__ == "__main__":
    key = jax.random.PRNGKey(0)
    k_x, k_w, k_b = jax.random.split(key, 3)

    B = 8            # batch of feature vectors
    IN = 512         # fixed by the module (nn.Linear(512, cls_classes))
    CLS = 10         # cls_classes

    # Deterministic synthetic parameters (PyTorch default init style).
    bound = 1.0 / (IN ** 0.5)
    w = jax.random.uniform(k_w, (CLS, IN), jnp.float32, -bound, bound)  # torch layout [out, in]
    b = jax.random.uniform(k_b, (CLS,), jnp.float32, -bound, bound)
    x = jax.random.normal(k_x, (B, IN), jnp.float32)

    w_t = jnp.transpose(w)  # [512, CLS] for the kernel

    # Single jit around the whole wrapper: no separate cast / pad / slice launches.
    linear_fn = jax.jit(lambda x, w_t, b: linear_classifier(x, w_t, b))

    y = linear_fn(x, w_t, b)
    y = jax.block_until_ready(y)

    # Reference check against plain JAX (same math as torch nn.Linear forward).
    # In-kernel bf16 cast of x/W (f32 accumulation) -> loosened tolerance.
    y_ref = x @ w.T + b
    assert y.shape == (B, CLS)
    assert y.dtype == jnp.float32
    assert jnp.allclose(y, y_ref, atol=2e-2, rtol=2e-2), "mismatch vs reference"

    print("KERNEL_OK")
</pallas_src>

<mosaic_0001>
module attributes {stable_mosaic.version = 11 : i64} {
  func.func @_linear_kernel(%arg0: i32, %arg1: memref<8x512xf32, #tpu.memory_space<vmem>>, %arg2: memref<512x128xbf16, #tpu.memory_space<vmem>>, %arg3: memref<1x128xf32, #tpu.memory_space<vmem>>, %arg4: memref<8x128xf32, #tpu.memory_space<vmem>>) attributes {dimension_semantics = [#tpu.dimension_semantics<parallel>], iteration_bounds = array<i64: 1>, scalar_prefetch = 0 : i64, scratch_operands = 0 : i64, tpu.core_type = #tpu.core_type<tc>, window_params = [{transform_indices = @transform_0, window_bounds = array<i64: 8, 512>}, {pipeline_mode = #tpu.pipeline_mode<synchronous>, transform_indices = @transform_1, window_bounds = array<i64: 512, 128>}, {pipeline_mode = #tpu.pipeline_mode<synchronous>, transform_indices = @transform_2, window_bounds = array<i64: 1, 128>}, {transform_indices = @transform_3, window_bounds = array<i64: 8, 128>}]} {
    %c0 = arith.constant 0 : index
    %c0_0 = arith.constant 0 : index
    %0 = vector.load %arg1[%c0, %c0_0] : memref<8x512xf32, #tpu.memory_space<vmem>>, vector<8x512xf32>
    %1 = arith.truncf %0 : vector<8x512xf32> to vector<8x512xbf16>
    %c0_1 = arith.constant 0 : index
    %c0_2 = arith.constant 0 : index
    %2 = vector.load %arg2[%c0_1, %c0_2] : memref<512x128xbf16, #tpu.memory_space<vmem>>, vector<512x128xbf16>
    %cst = arith.constant dense<0.000000e+00> : vector<8x128xf32>
    %3 = tpu.matmul %1, %2, %cst {dimension_numbers = #tpu.dot_dimension_numbers<[1], [0], [0], [1], [0, 0, 1, 1], [], []>} : vector<8x512xbf16>, vector<512x128xbf16>, vector<8x128xf32> -> vector<8x128xf32>
    %c0_3 = arith.constant 0 : index
    %c0_4 = arith.constant 0 : index
    %4 = vector.load %arg3[%c0_3, %c0_4] : memref<1x128xf32, #tpu.memory_space<vmem>>, vector<1x128xf32>
    %5 = vector.broadcast %4 : vector<1x128xf32> to vector<8x128xf32>
    %6 = arith.addf %3, %5 : vector<8x128xf32>
    %c0_5 = arith.constant 0 : index
    %c0_6 = arith.constant 0 : index
    %7 = vector.load %arg4[%c0_5, %c0_6] : memref<8x128xf32, #tpu.memory_space<vmem>>, vector<8x128xf32>
    tpu.vector_store %arg4[%c0_5, %c0_6], %6 {strides = array<i32>} : memref<8x128xf32, #tpu.memory_space<vmem>>, vector<8x128xf32>,
    return
  }
  func.func @transform_0(%arg0: i32) -> (i32, i32) {
    %c0_i32 = arith.constant 0 : i32
    %c0_i32_0 = arith.constant 0 : i32
    return %arg0, %c0_i32 : i32, i32
  }
  func.func @transform_1(%arg0: i32) -> (i32, i32) {
    %c0_i32 = arith.constant 0 : i32
    %c0_i32_0 = arith.constant 0 : i32
    %c0_i32_1 = arith.constant 0 : i32
    return %c0_i32, %c0_i32_0 : i32, i32
  }
  func.func @transform_2(%arg0: i32) -> (i32, i32) {
    %c0_i32 = arith.constant 0 : i32
    %c0_i32_0 = arith.constant 0 : i32
    %c0_i32_1 = arith.constant 0 : i32
    return %c0_i32, %c0_i32_0 : i32, i32
  }
  func.func @transform_3(%arg0: i32) -> (i32, i32) {
    %c0_i32 = arith.constant 0 : i32
    %c0_i32_0 = arith.constant 0 : i32
    return %arg0, %c0_i32 : i32, i32
  }
}

</mosaic_0001>

<bundles_post_ra>
// kernel: _lambda_.1
= control target key start
LH: loop header
LB: loop body
LE: loop exit
PB: predicated region body
PF: predicated region fallthrough
CT: control target
= control target key end

     0   :  { %s649_s0 = inlined_call_operand.vmem [shape: f32[8,512], index: 0, kind: input, shape index: {}]   ;;  %s650_s1 = inlined_call_operand.vmem [shape: bf16[512,128], index: 1, kind: input, shape index: {}]   ;;  %s651_s2 = inlined_call_operand.vmem [shape: f32[1,128], index: 2, kind: input, shape index: {}]   ;;  %s652_s3 = inlined_call_operand.hbm [shape: f32[8,128], index: 3, kind: output, shape index: {}]  }
   0x1   :  { %v460_v0 = vld [vmem:[%s650_s1 + $0x78] sm:$0xff]   ;;  %v464_v4 = vld [vmem:[%s650_s1 + $0x70] sm:$0xff]   ;;  %v468_v8 = vld [vmem:[%s650_s1 + $0x68] sm:$0xff]  }
   0x2   :  { %v461_v1 = vld [vmem:[%s650_s1 + $0xf8] sm:$0xff]   ;;  %415 = vmatprep.subr.bf16.mxu0 %v460_v0  ;;  %v465_v5 = vld [vmem:[%s650_s1 + $0xf0] sm:$0xff]   ;;  %v469_v9 = vld [vmem:[%s650_s1 + $0xe8] sm:$0xff]  }
   0x3   :  { %v462_v2 = vld [vmem:[%s650_s1 + $0x38] sm:$0xff]   ;;  %437 = vmatprep.subr.bf16.mxu1 %v461_v1  ;;  %v466_v6 = vld [vmem:[%s650_s1 + $0x30] sm:$0xff]   ;;  %v470_v10 = vld [vmem:[%s650_s1 + $0x28] sm:$0xff]  }
   0x4   :  { %v463_v3 = vld [vmem:[%s650_s1 + $0xb8] sm:$0xff]   ;;  %416 = vmatpush3.bf16.msra.mxu0 %v462_v2  ;;  %v467_v7 = vld [vmem:[%s650_s1 + $0xb0] sm:$0xff]   ;;  %v471_v11 = vld [vmem:[%s650_s1 + $0xa8] sm:$0xff]  }
   0x5   :  { %438 = vmatpush3.bf16.msra.mxu1 %v463_v3  ;;  %417 = vmatprep.subr.bf16.mxu0 %v464_v4  ;;  %v472_v12 = vld [vmem:[%s650_s1 + $0x60] sm:$0xff]   ;;  %v476_v16 = vld [vmem:[%s650_s1 + $0x58] sm:$0xff]   ;;  %v480_v20 = vld [vmem:[%s650_s1 + $0x50] sm:$0xff]  }
   0x6   :  { %439 = vmatprep.subr.bf16.mxu1 %v465_v5  ;;  %v473_v13 = vld [vmem:[%s650_s1 + $0xe0] sm:$0xff]   ;;  %v477_v17 = vld [vmem:[%s650_s1 + $0xd8] sm:$0xff]   ;;  %v481_v21 = vld [vmem:[%s650_s1 + $0xd0] sm:$0xff]  }
   0x7   :  { %v474_v14 = vld [vmem:[%s650_s1 + $0x20] sm:$0xff]   ;;  %v478_v18 = vld [vmem:[%s650_s1 + $0x18] sm:$0xff]   ;;  %v482_v22 = vld [vmem:[%s650_s1 + $0x10] sm:$0xff]  }
   0x8   :  { %418 = vmatpush3.bf16.msra.mxu0 %v466_v6  ;;  %v475_v15 = vld [vmem:[%s650_s1 + $0xa0] sm:$0xff]   ;;  %v479_v19 = vld [vmem:[%s650_s1 + $0x98] sm:$0xff]   ;;  %v483_v23 = vld [vmem:[%s650_s1 + $0x90] sm:$0xff]  }
   0x9   :  { %440 = vmatpush3.bf16.msra.mxu1 %v467_v7  ;;  %419 = vmatprep.subr.bf16.mxu0 %v468_v8  ;;  %v484_v24 = vld [vmem:[%s650_s1 + $0x48] sm:$0xff]   ;;  %v488_v28 = vld [vmem:[%s650_s1 + $0x40] sm:$0xff]   ;;  %v19_v33 = vld [vmem:[%s649_s0 + $0x18] sm:$0xff] }
   0xa   :  { %441 = vmatprep.subr.bf16.mxu1 %v469_v9  ;;  %v485_v25 = vld [vmem:[%s650_s1 + $0xc8] sm:$0xff]   ;;  %v489_v29 = vld [vmem:[%s650_s1 + $0xc0] sm:$0xff]   ;;  %v23_v36 = vpack.c.bf16 %v19_v33, %v19_v33  ;;  %v18_v38 = vld [vmem:[%s649_s0 + $0x10] sm:$0xff] }
   0xb   :  { %v486_v26 = vld [vmem:[%s650_s1 + $0x8] sm:$0xff]   ;;  %v490_v30 = vld [vmem:[%s650_s1] sm:$0xff]  }
   0xc   :  { %420 = vmatpush3.bf16.msra.mxu0 %v470_v10  ;;  %v487_v27 = vld [vmem:[%s650_s1 + $0x88] sm:$0xff]   ;;  %v491_v31 = vld [vmem:[%s650_s1 + $0x80] sm:$0xff]  }
   0xd   :  { %442 = vmatpush3.bf16.msra.mxu1 %v471_v11  ;;  %421 = vmatprep.subr.bf16.mxu0 %v472_v12  ;;  %v17_v32 = vld [vmem:[%s649_s0 + $0x8] sm:$0xff]  ;;  %v16_v34 = vld [vmem:[%s649_s0] sm:$0xff] }
   0xe   :  { %443 = vmatprep.subr.bf16.mxu1 %v473_v13  ;;  %v21_v35 = vpack.c.bf16 %v17_v32, %v17_v32  ;;  %v20_v37 = vpack.c.bf16 %v16_v34, %v16_v34 }
  0x10   :  { %422 = vmatpush3.bf16.msra.mxu0 %v474_v14 }
  0x11   :  { %444 = vmatpush3.bf16.msra.mxu1 %v475_v15  ;;  %423 = vmatprep.subr.bf16.mxu0 %v476_v16 }
  0x12   :  { %445 = vmatprep.subr.bf16.mxu1 %v477_v17 }
  0x14   :  { %424 = vmatpush3.bf16.msra.mxu0 %v478_v18 }
  0x15   :  { %446 = vmatpush3.bf16.msra.mxu1 %v479_v19  ;;  %425 = vmatprep.subr.bf16.mxu0 %v480_v20 }
  0x16   :  { %447 = vmatprep.subr.bf16.mxu1 %v481_v21 }
  0x18   :  { %426 = vmatpush3.bf16.msra.mxu0 %v482_v22 }
  0x19   :  { %448 = vmatpush3.bf16.msra.mxu1 %v483_v23  ;;  %427 = vmatprep.subr.bf16.mxu0 %v484_v24 }
  0x1a   :  { %449 = vmatprep.subr.bf16.mxu1 %v485_v25 }
  0x1c   :  { %428 = vmatpush3.bf16.msra.mxu0 %v486_v26 }
  0x1d   :  { %450 = vmatpush3.bf16.msra.mxu1 %v487_v27  ;;  %429 = vmatprep.subr.bf16.mxu0 %v488_v28 }
  0x1e   :  { %451 = vmatprep.subr.bf16.mxu1 %v489_v29 }
  0x20   :  { %430 = vmatpush3.bf16.msra.mxu0 %v490_v30 }
  0x21   :  { %452 = vmatpush3.bf16.msra.mxu1 %v491_v31 }
  0x22   :  { %8 = vsyncpa [#allocation3], 0  ;;  %v22_v39 = vpack.c.bf16 %v18_v38, %v18_v38  ;;  %319 = vmatprep.mubr.bf16.mxu0 %v21_v35  ;;  %359 = vmatprep.mubr.bf16.mxu1 %v23_v36  ;;  %v382_v42 = vld [vmem:[%s651_s2] ss:$0 sm:$0xff]  ;;  %s514_s4 = smov [#allocation2]  }
  0x23   :  { %320 = vmatmul.mubr.bf16.vlgmr.msra.gmra.mxu0 %v20_v37  ;;  %s374_s5 = sshll.u32 %s514_s4, 4  ;;  %s375_s5 = int_to_ptr.vmem [resolvable:$true] %s374_s5 }
  0x24   :  { %360 = vmatmul.mubr.bf16.vlgmr.msra.gmra.mxu1 %v22_v39  ;;  %s492_s0 = scalar_lea.vmem %s375_s5, 128  ;;  %p497_p1 = scmp.lt.s32.totalorder %s375_s5, %s375_s5 }
  0x25   :  { %p493_p0 = scmp.ne.s32.totalorder %s375_s5, %s492_s0  ;;  %p498_p2 = scmp.lt.s32.totalorder %s492_s0, %s492_s0 }
  0x27   :  { %p499_p3 = por %p498_p2, %p497_p1 }
  0x29   :  { %p500_p4 = pnand %p499_p3, %p493_p0 }
  0xe3   :  { %v431_v40 = vpop.f32.mrf.mxu0 }
  0xe4   :  { %v453_v41 = vpop.f32.mrf.mxu1 }
  0xe5   :  { %v432_v43 = vpop.f32.mrf.mxu0 }
  0xe6   :  { %v454_v44 = vpop.f32.mrf.mxu1  ;;  %v433_v45 = vadd.f32 %v432_v43, %v431_v40 }
  0xe7   :  { %v434_v46 = vpop.f32.mrf.mxu0  ;;  %v455_v49 = vadd.f32 %v454_v44, %v453_v41 }
  0xe8   :  { %v456_v47 = vpop.f32.mrf.mxu1  ;;  %v322_v48 = vadd.f32 %v433_v45, %v382_v42 }
  0xe9   :  { %v435_v50 = vpop.f32.mrf.mxu0 }
  0xea   :  { %v457_v51 = vpop.f32.mrf.mxu1  ;;  %v362_v52 = vadd.f32 %v455_v49, %v322_v48 }
  0xec   :  { %367 = vst [vmem:[#allocation2] sm:$0xff] %v362_v52 }
  0xed   :  { %503 = shalt.err (!%p500_p4)
}
  0xee   :  { %377 = dma.vmem_to_hbm [thread:$0]  %s375_s5, 128, %s652_s3, [#allocation3]  }
  0xef   :  { %512 = dma.done.wait [#allocation3], 128  }
  0xf0   :  { %513 = vsyncadd [#allocation3], 4294967168 }
  0xf1   :  { %381 = vsyncpa [#allocation3], 1 }

</bundles_post_ra>
